<compile_context>
chip_gen: v7x
topology: tpu7x:2x2x1
jax: 0.10.0
libtpu: 0.0.40
codegen_flags: <defaults>
</compile_context>

<pallas_src>
import functools

import jax
import jax.numpy as jnp
from jax.experimental import pallas as pl
from jax.experimental.pallas import tpu as pltpu

_BN_EPS = 1e-5
_MATMUL_DTYPE = jnp.bfloat16   # MXU-native operands; accumulation is f32


def _round_up(x, m):
    return (x + m - 1) // m * m


# ---------------------------------------------------------------------------
# Pallas kernels: tiled (im2col-matmul) conv + BN affine (+ residual) (+ ReLU)
# ---------------------------------------------------------------------------
def _conv_matmul_kernel(x_ref, w_ref, sb_ref, o_ref, acc_ref, *, relu, nk):
    k = pl.program_id(2)

    @pl.when(k == 0)
    def _init():
        acc_ref[...] = jnp.zeros_like(acc_ref)

    acc_ref[...] += jnp.dot(x_ref[...], w_ref[...],
                            preferred_element_type=jnp.float32)

    @pl.when(k == nk - 1)
    def _epilogue():
        y = acc_ref[...] * sb_ref[0:1, :] + sb_ref[1:2, :]
        if relu:
            y = jnp.maximum(y, 0.0)
        o_ref[...] = y.astype(o_ref.dtype)


def _conv_matmul_res_kernel(x_ref, w_ref, sb_ref, r_ref, o_ref, acc_ref, *, nk):
    k = pl.program_id(2)

    @pl.when(k == 0)
    def _init():
        acc_ref[...] = jnp.zeros_like(acc_ref)

    acc_ref[...] += jnp.dot(x_ref[...], w_ref[...],
                            preferred_element_type=jnp.float32)

    @pl.when(k == nk - 1)
    def _epilogue():
        # NOTE: the reference ResidualBlock does `x = blocks(x); x += residual;
        # return x` with NO activation after the residual add (ReLU lives only
        # between the two conv_bn stages), so no ReLU here.
        y = acc_ref[...] * sb_ref[0:1, :] + sb_ref[1:2, :] + r_ref[...]
        o_ref[...] = y.astype(o_ref.dtype)


def fused_conv_matmul(x, w, scale, bias, *, relu, residual=None):
    """act((x @ w) * scale + bias [+ residual]).

    x: (M, K) f32 patch matrix, w: (K, C) f32, scale/bias: (C,) f32,
    residual: (M, C) f32 or None.  Returns (M, C) f32.
    """
    M, K = x.shape
    _, C = w.shape

    # --- tile sizes: lane-dense output, safe on v7x's smaller VMEM ----------
    tn = 128                                    # output lanes (multiple of 128)
    tm = min(256, _round_up(M, 8))              # output sublanes
    if K <= 1024:
        tk, K_pad = K, K                        # single K block (full extent)
    else:
        tk = 512
        K_pad = _round_up(K, tk)
    M_pad = _round_up(M, tm)
    C_pad = _round_up(C, tn)
    nm, nn, nk = M_pad // tm, C_pad // tn, K_pad // tk

    # --- pad + cast operands (zero padding contributes nothing) -------------
    xc = jnp.pad(x, ((0, M_pad - M), (0, K_pad - K))).astype(_MATMUL_DTYPE)
    wc = jnp.pad(w, ((0, K_pad - K), (0, C_pad - C))).astype(_MATMUL_DTYPE)
    sb = jnp.stack([jnp.pad(scale.astype(jnp.float32), (0, C_pad - C)),
                    jnp.pad(bias.astype(jnp.float32), (0, C_pad - C))])  # (2, C_pad)

    in_specs = [
        pl.BlockSpec((tm, tk), lambda i, j, k: (i, k)),
        pl.BlockSpec((tk, tn), lambda i, j, k: (k, j)),
        pl.BlockSpec((2, tn), lambda i, j, k: (0, j)),
    ]
    args = [xc, wc, sb]
    itemsize = jnp.dtype(_MATMUL_DTYPE).itemsize
    bytes_accessed = (xc.size * itemsize * nn          # x read once per j tile
                      + wc.size * itemsize * nm        # w read once per i tile
                      + M_pad * C_pad * 4)             # output write
    if residual is not None:
        rc = jnp.pad(residual.astype(jnp.float32),
                     ((0, M_pad - M), (0, C_pad - C)))
        in_specs.append(pl.BlockSpec((tm, tn), lambda i, j, k: (i, j)))
        args.append(rc)
        bytes_accessed += M_pad * C_pad * 4
        kernel = functools.partial(_conv_matmul_res_kernel, nk=nk)
    else:
        kernel = functools.partial(_conv_matmul_kernel, relu=relu, nk=nk)

    out = pl.pallas_call(
        kernel,
        out_shape=jax.ShapeDtypeStruct((M_pad, C_pad), jnp.float32),
        grid=(nm, nn, nk),
        in_specs=in_specs,
        out_specs=pl.BlockSpec((tm, tn), lambda i, j, k: (i, j)),
        scratch_shapes=[pltpu.VMEM((tm, tn), jnp.float32)],
        compiler_params=pltpu.CompilerParams(
            dimension_semantics=("parallel", "parallel", "arbitrary"),
            vmem_limit_bytes=32 * 1024 * 1024),
        cost_estimate=pl.CostEstimate(
            flops=2 * M_pad * K_pad * C_pad,
            transcendentals=0,
            bytes_accessed=int(bytes_accessed)),
    )(*args)

    return out[:M, :C]


# ---------------------------------------------------------------------------
# Glue: im2col, BN folding, block / layer wiring (plain JAX)
# ---------------------------------------------------------------------------
def _im2col(x, k, stride, pad):
    """x: (N, H, W, C) NHWC -> patches (N, Ho, Wo, k*k*C)."""
    N, H, W, C = x.shape
    xp = jnp.pad(x, ((0, 0), (pad, pad), (pad, pad), (0, 0)))
    Ho = (H + 2 * pad - k) // stride + 1
    Wo = (W + 2 * pad - k) // stride + 1
    cols = []
    for dy in range(k):
        for dx in range(k):
            cols.append(xp[:, dy:dy + stride * (Ho - 1) + 1:stride,
                           dx:dx + stride * (Wo - 1) + 1:stride, :])
    return jnp.concatenate(cols, axis=-1), Ho, Wo


def _fold_bn(bn):
    gamma, beta, mean, var = bn
    scale = gamma / jnp.sqrt(var + _BN_EPS)
    bias = beta - mean * scale
    return scale, bias


def conv_bn_pallas(x_nhwc, weight, bn, *, stride, relu, residual=None):
    """weight in PyTorch layout (Cout, Cin, kh, kw); x in NHWC."""
    Cout, Cin, kh, kw = weight.shape
    pad = kh // 2                                 # Conv2dAuto 'same'-style padding
    patches, Ho, Wo = _im2col(x_nhwc, kh, stride, pad)
    N = x_nhwc.shape[0]
    M = N * Ho * Wo
    x2 = patches.reshape(M, kh * kw * Cin)
    w2 = jnp.transpose(weight, (2, 3, 1, 0)).reshape(kh * kw * Cin, Cout)
    scale, bias = _fold_bn(bn)
    res2 = residual.reshape(M, Cout) if residual is not None else None
    y = fused_conv_matmul(x2, w2, scale, bias, relu=relu, residual=res2)
    return y.reshape(N, Ho, Wo, Cout)


def resnet_basic_block(x_nhwc, p, *, downsampling, apply_shortcut):
    if apply_shortcut:
        # shortcut: 1x1 conv (stride=downsampling) + BN, fused in the kernel
        residual = conv_bn_pallas(x_nhwc, p["w_sc"], p["bn_sc"],
                                  stride=downsampling, relu=False)
    else:
        residual = x_nhwc
    # blocks: conv3x3(stride=ds)+BN+ReLU, then conv3x3(stride=1)+BN (+residual)
    h = conv_bn_pallas(x_nhwc, p["w1"], p["bn1"], stride=downsampling, relu=True)
    out = conv_bn_pallas(h, p["w2"], p["bn2"], stride=1, relu=False,
                         residual=residual)
    return out


def resnet_layer(x_nchw, params, in_channels, out_channels):
    ds = 2 if in_channels != out_channels else 1
    x = jnp.transpose(x_nchw, (0, 2, 3, 1))       # NCHW -> NHWC
    for i, p in enumerate(params):
        block_in = in_channels if i == 0 else out_channels
        block_ds = ds if i == 0 else 1
        x = resnet_basic_block(x, p, downsampling=block_ds,
                               apply_shortcut=(block_in != out_channels))
    return jnp.transpose(x, (0, 3, 1, 2))         # NHWC -> NCHW


# ---------------------------------------------------------------------------
# Pure-JAX reference (for a numerical sanity check of the fused kernels)
# ---------------------------------------------------------------------------
def _conv_bn_ref(x_nhwc, weight, bn, *, stride, relu, residual=None):
    w_hwio = jnp.transpose(weight, (2, 3, 1, 0))
    pad = weight.shape[2] // 2
    y = jax.lax.conv_general_dilated(
        x_nhwc, w_hwio, window_strides=(stride, stride),
        padding=((pad, pad), (pad, pad)),
        dimension_numbers=("NHWC", "HWIO", "NHWC"))
    scale, bias = _fold_bn(bn)
    y = y * scale + bias
    if relu:
        y = jnp.maximum(y, 0.0)
    if residual is not None:
        y = y + residual
    return y


def resnet_layer_ref(x_nchw, params, in_channels, out_channels):
    ds = 2 if in_channels != out_channels else 1
    x = jnp.transpose(x_nchw, (0, 2, 3, 1))
    for i, p in enumerate(params):
        block_in = in_channels if i == 0 else out_channels
        block_ds = ds if i == 0 else 1
        if block_in != out_channels:
            residual = _conv_bn_ref(x, p["w_sc"], p["bn_sc"],
                                    stride=block_ds, relu=False)
        else:
            residual = x
        h = _conv_bn_ref(x, p["w1"], p["bn1"], stride=block_ds, relu=True)
        x = _conv_bn_ref(h, p["w2"], p["bn2"], stride=1, relu=False,
                         residual=residual)
    return jnp.transpose(x, (0, 3, 1, 2))


# ---------------------------------------------------------------------------
# Deterministic parameter construction (shapes match the PyTorch module)
# ---------------------------------------------------------------------------
def _make_bn(key, c):
    k1, k2, k3, k4 = jax.random.split(key, 4)
    gamma = 1.0 + 0.1 * jax.random.normal(k1, (c,), jnp.float32)
    beta = 0.1 * jax.random.normal(k2, (c,), jnp.float32)
    mean = 0.1 * jax.random.normal(k3, (c,), jnp.float32)
    var = jnp.abs(1.0 + 0.1 * jax.random.normal(k4, (c,), jnp.float32))
    return (gamma, beta, mean, var)


def make_layer_params(key, in_channels, out_channels, n=1):
    params = []
    for i in range(n):
        cin = in_channels if i == 0 else out_channels
        key, k1, k2, k3, k4, k5, k6 = jax.random.split(key, 7)
        p = {
            "w1": 0.1 * jax.random.normal(k1, (out_channels, cin, 3, 3), jnp.float32),
            "bn1": _make_bn(k2, out_channels),
            "w2": 0.1 * jax.random.normal(k3, (out_channels, out_channels, 3, 3),
                                          jnp.float32),
            "bn2": _make_bn(k4, out_channels),
        }
        if cin != out_channels:
            p["w_sc"] = 0.1 * jax.random.normal(k5, (out_channels, cin, 1, 1),
                                                jnp.float32)
            p["bn_sc"] = _make_bn(k6, out_channels)
        params.append(p)
    return params


if __name__ == "__main__":
    key = jax.random.PRNGKey(0)
    kx, kp = jax.random.split(key)

    N, C_IN, C_OUT, H, W = 2, 4, 8, 16, 16      # in != out -> downsampling=2
    x = jax.random.normal(kx, (N, C_IN, H, W), jnp.float32)
    params = make_layer_params(kp, C_IN, C_OUT, n=1)

    y = jax.block_until_ready(resnet_layer(x, params, C_IN, C_OUT))
    assert y.shape == (N, C_OUT, H // 2, W // 2), y.shape

    # numerical sanity check vs. pure-JAX reference (bf16 MXU operands -> loose tol)
    y_ref = jax.block_until_ready(resnet_layer_ref(x, params, C_IN, C_OUT))
    err = float(jnp.max(jnp.abs(y - y_ref)))
    assert err < 1e-1, f"max abs error vs reference: {err}"

    print("KERNEL_OK")
</pallas_src>

<mosaic_0001>
module attributes {stable_mosaic.version = 11 : i64} {
  func.func @_conv_matmul_kernel(%arg0: i32, %arg1: i32, %arg2: i32, %arg3: memref<128x4xbf16, #tpu.memory_space<vmem>>, %arg4: memref<4x128xbf16, #tpu.memory_space<vmem>>, %arg5: memref<2x128xf32, #tpu.memory_space<vmem>>, %arg6: memref<128x128xf32, #tpu.memory_space<vmem>>, %arg7: memref<128x128xf32, #tpu.memory_space<vmem>>) attributes {dimension_semantics = [#tpu.dimension_semantics<parallel>, #tpu.dimension_semantics<parallel>, #tpu.dimension_semantics<arbitrary>], iteration_bounds = array<i64: 1, 1, 1>, scalar_prefetch = 0 : i64, scratch_operands = 1 : i64, tpu.core_type = #tpu.core_type<tc>, window_params = [{transform_indices = @transform_0, window_bounds = array<i64: 128, 4>}, {transform_indices = @transform_1, window_bounds = array<i64: 4, 128>}, {transform_indices = @transform_2, window_bounds = array<i64: 2, 128>}, {transform_indices = @transform_3, window_bounds = array<i64: 128, 128>}]} {
    %c0_i32 = arith.constant 0 : i32
    %0 = arith.cmpi eq, %arg2, %c0_i32 : i32
    %1 = arith.extui %0 : i1 to i32
    %c0_i32_0 = arith.constant 0 : i32
    %2 = arith.cmpi ne, %1, %c0_i32_0 : i32
    scf.if %2 {
      %cst_10 = arith.constant 0.000000e+00 : f32
      %12 = vector.broadcast %cst_10 : f32 to vector<128x128xf32>
      %c0_11 = arith.constant 0 : index
      %c0_12 = arith.constant 0 : index
      %13 = vector.load %arg7[%c0_11, %c0_12] : memref<128x128xf32, #tpu.memory_space<vmem>>, vector<128x128xf32>
      tpu.vector_store %arg7[%c0_11, %c0_12], %12 {strides = array<i32>} : memref<128x128xf32, #tpu.memory_space<vmem>>, vector<128x128xf32>,
    } else {
    }
    %c0 = arith.constant 0 : index
    %c0_1 = arith.constant 0 : index
    %3 = vector.load %arg7[%c0, %c0_1] : memref<128x128xf32, #tpu.memory_space<vmem>>, vector<128x128xf32>
    %c0_2 = arith.constant 0 : index
    %c0_3 = arith.constant 0 : index
    %4 = vector.load %arg3[%c0_2, %c0_3] : memref<128x4xbf16, #tpu.memory_space<vmem>>, vector<128x4xbf16>
    %c0_4 = arith.constant 0 : index
    %c0_5 = arith.constant 0 : index
    %5 = vector.load %arg4[%c0_4, %c0_5] : memref<4x128xbf16, #tpu.memory_space<vmem>>, vector<4x128xbf16>
    %cst = arith.constant dense<0.000000e+00> : vector<128x128xf32>
    %6 = tpu.matmul %4, %5, %cst {dimension_numbers = #tpu.dot_dimension_numbers<[1], [0], [0], [1], [0, 0, 1, 1], [], []>} : vector<128x4xbf16>, vector<4x128xbf16>, vector<128x128xf32> -> vector<128x128xf32>
    %7 = arith.addf %3, %6 : vector<128x128xf32>
    %c0_6 = arith.constant 0 : index
    %c0_7 = arith.constant 0 : index
    %8 = vector.load %arg7[%c0_6, %c0_7] : memref<128x128xf32, #tpu.memory_space<vmem>>, vector<128x128xf32>
    tpu.vector_store %arg7[%c0_6, %c0_7], %7 {strides = array<i32>} : memref<128x128xf32, #tpu.memory_space<vmem>>, vector<128x128xf32>,
    %c0_i32_8 = arith.constant 0 : i32
    %9 = arith.cmpi eq, %arg2, %c0_i32_8 : i32
    %10 = arith.extui %9 : i1 to i32
    %c0_i32_9 = arith.constant 0 : i32
    %11 = arith.cmpi ne, %10, %c0_i32_9 : i32
    scf.if %11 {
      %c0_10 = arith.constant 0 : index
      %c0_11 = arith.constant 0 : index
      %12 = vector.load %arg7[%c0_10, %c0_11] : memref<128x128xf32, #tpu.memory_space<vmem>>, vector<128x128xf32>
      %c0_12 = arith.constant 0 : index
      %c0_13 = arith.constant 0 : index
      %13 = vector.load %arg5[%c0_12, %c0_13] : memref<2x128xf32, #tpu.memory_space<vmem>>, vector<1x128xf32>
      %14 = vector.broadcast %13 : vector<1x128xf32> to vector<128x128xf32>
      %15 = arith.mulf %12, %14 : vector<128x128xf32>
      %c1 = arith.constant 1 : index
      %c0_14 = arith.constant 0 : index
      %16 = vector.load %arg5[%c1, %c0_14] : memref<2x128xf32, #tpu.memory_space<vmem>>, vector<1x128xf32>
      %17 = vector.broadcast %16 : vector<1x128xf32> to vector<128x128xf32>
      %18 = arith.addf %15, %17 : vector<128x128xf32>
      %c0_15 = arith.constant 0 : index
      %c0_16 = arith.constant 0 : index
      %19 = vector.load %arg6[%c0_15, %c0_16] : memref<128x128xf32, #tpu.memory_space<vmem>>, vector<128x128xf32>
      tpu.vector_store %arg6[%c0_15, %c0_16], %18 {strides = array<i32>} : memref<128x128xf32, #tpu.memory_space<vmem>>, vector<128x128xf32>,
    } else {
    }
    return
  }
  func.func @transform_0(%arg0: i32, %arg1: i32, %arg2: i32) -> (i32, i32) {
    %c0_i32 = arith.constant 0 : i32
    return %arg0, %arg2 : i32, i32
  }
  func.func @transform_1(%arg0: i32, %arg1: i32, %arg2: i32) -> (i32, i32) {
    %c0_i32 = arith.constant 0 : i32
    return %arg2, %arg1 : i32, i32
  }
  func.func @transform_2(%arg0: i32, %arg1: i32, %arg2: i32) -> (i32, i32) {
    %c0_i32 = arith.constant 0 : i32
    %c0_i32_0 = arith.constant 0 : i32
    return %c0_i32, %arg1 : i32, i32
  }
  func.func @transform_3(%arg0: i32, %arg1: i32, %arg2: i32) -> (i32, i32) {
    %c0_i32 = arith.constant 0 : i32
    return %arg0, %arg1 : i32, i32
  }
}

</mosaic_0001>

<bundles_post_ra>
// kernel: tpu_custom_call.1
= control target key start
LH: loop header
LB: loop body
LE: loop exit
PB: predicated region body
PF: predicated region fallthrough
CT: control target
= control target key end

     0   :  { %vm134_vm0 = vcmask 1041408   ;;  %vm109_vm1 = vcmask 31744   ;;  %s538_s0 = inlined_call_operand.vmem [shape: bf16[128,4], index: 0, kind: input, shape index: {}]   ;;  %s539_s1 = inlined_call_operand.vmem [shape: bf16[4,128], index: 1, kind: input, shape index: {}]   ;;  %s540_s2 = inlined_call_operand.vmem [shape: f32[2,128], index: 2, kind: input, shape index: {}]   ;;  %s541_s3 = inlined_call_operand.hbm [shape: f32[128,128], index: 3, kind: output, shape index: {}]  }
   0x1   :  { %v68_v0 = vld [vmem:[%s539_s1] sm:$0x3]  ;;  %v414_v4 = vld [vmem:[%s538_s0 + $0x8] sm:$0xff]   ;;  %v416_v6 = vld [vmem:[%s538_s0 + $0x10] sm:$0xff]  }
   0x2   :  { %v412_v1 = vld [vmem:[%s538_s0] sm:$0xff]   ;;  %407 = vmatprep.subr.msk.bf16.mxu0 %vm134_vm0, %v68_v0  ;;  %408 = vmatprep.subr.msk.bf16.mxu1 %vm134_vm0, %v68_v0  ;;  %v136_v2 = vsel %vm134_vm0, %v68_v0, 0  ;;  %v415_v5 = vld [vmem:[%s538_s0 + $0x28] sm:$0xff]   ;;  %v417_v7 = vld [vmem:[%s538_s0 + $0x30] sm:$0xff]  }
   0x3   :  { %388 = vmatpush3.bf16.msra.mxu0 %v136_v2  ;;  %406 = vmatpush3.bf16.msra.mxu1 %v136_v2  ;;  %v413_v3 = vld [vmem:[%s538_s0 + $0x20] sm:$0xff]  }
   0x4   :  { %389 = vmatprep.mubr.msk.bf16.mxu0 %vm109_vm1, %v412_v1  ;;  %397 = vmatprep.mubr.msk.bf16.mxu1 %vm109_vm1, %v413_v3 }
   0x6   :  { %390 = vmatmul.mubr.msk.bf16.vlgmr.msra.gmra.mrb[0].mxu0 %vm109_vm1, %v414_v4  ;;  %398 = vmatmul.mubr.msk.bf16.vlgmr.msra.gmra.mrb[0].mxu1 %vm109_vm1, %v415_v5 }
   0x7   :  { %393 = vmatprep.mubr.msk.bf16.mxu0 %vm109_vm1, %v416_v6  ;;  %401 = vmatprep.mubr.msk.bf16.mxu1 %vm109_vm1, %v417_v7 }
   0x8   :  { %8 = vsyncpa [#allocation4], 0  ;;  %v418_v8 = vld [vmem:[%s538_s0 + $0x18] sm:$0xff]   ;;  %v376_v10 = vld [vmem:[%s540_s2] ss:$0 sm:$0xff] }
   0x9   :  { %v419_v9 = vld [vmem:[%s538_s0 + $0x38] sm:$0xff]   ;;  %v508_v12 = vld [vmem:[%s540_s2 + $0x1] ss:$0 sm:$0xff]  ;;  %s444_s0 = smov [#allocation3]  }
   0xa   :  { %s349_s2 = sshll.u32 %s444_s0, 4  ;;  %s350_s2 = int_to_ptr.vmem [resolvable:$true] %s349_s2 }
   0xb   :  { %s420_s6 = scalar_lea.vmem %s350_s2, 2048  ;;  %p425_p1 = scmp.lt.s32.totalorder %s350_s2, %s350_s2 }
   0xc   :  { %p421_p0 = scmp.ne.s32.totalorder %s350_s2, %s420_s6  ;;  %p426_p2 = scmp.lt.s32.totalorder %s420_s6, %s420_s6 }
   0xe   :  { %394 = vmatmul.mubr.msk.bf16.gmra.mrb[4].mxu0 %vm109_vm1, %v418_v8  ;;  %402 = vmatmul.mubr.msk.bf16.gmra.mrb[4].mxu1 %vm109_vm1, %v419_v9  ;;  %p427_p3 = por %p426_p2, %p425_p1 }
  0x10   :  { %p428_p4 = pnand %p427_p3, %p421_p0 }
  0xd9   :  { %v391_v11 = vpop.f32.mrb[0].mxu0  ;;  %v399_v14 = vpop.f32.mrb[0].mxu1 }
  0xda   :  { %v293_v13 = vmul.f32 %v391_v11, %v376_v10  ;;  %v172_v15 = vpop.f32.mrb[1].mxu0  ;;  %v301_v16 = vmul.f32 %v399_v14, %v376_v10  ;;  %v204_v18 = vpop.f32.mrb[1].mxu1 }
  0xdb   :  { %v291_v17 = vmul.f32 %v376_v10, %v172_v15  ;;  %v392_v19 = vpop.f32.mrb[2].mxu0  ;;  %v299_v21 = vmul.f32 %v376_v10, %v204_v18  ;;  %v400_v23 = vpop.f32.mrb[2].mxu1 }
  0xdc   :  { %v314_v20 = vadd.f32 %v508_v12, %v293_v13  ;;  %v294_v22 = vmul.f32 %v392_v19, %v376_v10  ;;  %v175_v24 = vpop.f32.mrb[3].mxu0  ;;  %v322_v25 = vadd.f32 %v508_v12, %v301_v16  ;;  %v302_v27 = vmul.f32 %v400_v23, %v376_v10  ;;  %v207_v29 = vpop.f32.mrb[3].mxu1 }
  0xdd   :  { %v312_v26 = vadd.f32 %v508_v12, %v291_v17  ;;  %v292_v28 = vmul.f32 %v376_v10, %v175_v24  ;;  %v320_v30 = vadd.f32 %v508_v12, %v299_v21  ;;  %v300_v32 = vmul.f32 %v376_v10, %v207_v29 }
  0xde   :  { %330 = vst [vmem:[#allocation3 + $0x10] sm:$0xff] %v314_v20  ;;  %v315_v31 = vadd.f32 %v508_v12, %v294_v22  ;;  %338 = vst [vmem:[#allocation3 + $0x50] sm:$0xff] %v322_v25  ;;  %v323_v33 = vadd.f32 %v508_v12, %v302_v27 }
  0xdf   :  { %328 = vst [vmem:[#allocation3] sm:$0xff] %v312_v26  ;;  %v313_v34 = vadd.f32 %v508_v12, %v292_v28  ;;  %336 = vst [vmem:[#allocation3 + $0x40] sm:$0xff] %v320_v30  ;;  %v321_v35 = vadd.f32 %v508_v12, %v300_v32 }
  0xe0   :  { %331 = vst [vmem:[#allocation3 + $0x18] sm:$0xff] %v315_v31  ;;  %339 = vst [vmem:[#allocation3 + $0x58] sm:$0xff] %v323_v33 }
  0xe1   :  { %329 = vst [vmem:[#allocation3 + $0x8] sm:$0xff] %v313_v34  ;;  %v395_v36 = vpop.f32.mrb[4].mxu0  ;;  %337 = vst [vmem:[#allocation3 + $0x48] sm:$0xff] %v321_v35  ;;  %v403_v38 = vpop.f32.mrb[4].mxu1 }
  0xe2   :  { %v297_v37 = vmul.f32 %v395_v36, %v376_v10  ;;  %v188_v39 = vpop.f32.mrb[5].mxu0  ;;  %v305_v40 = vmul.f32 %v403_v38, %v376_v10  ;;  %v220_v42 = vpop.f32.mrb[5].mxu1 }
  0xe3   :  { %v295_v41 = vmul.f32 %v376_v10, %v188_v39  ;;  %v396_v43 = vpop.f32.mrb[6].mxu0  ;;  %v303_v45 = vmul.f32 %v376_v10, %v220_v42  ;;  %v404_v47 = vpop.f32.mrb[6].mxu1 }
  0xe4   :  { %v318_v44 = vadd.f32 %v508_v12, %v297_v37  ;;  %v298_v46 = vmul.f32 %v396_v43, %v376_v10  ;;  %v191_v48 = vpop.f32.mrb[7].mxu0  ;;  %v326_v49 = vadd.f32 %v508_v12, %v305_v40  ;;  %v306_v51 = vmul.f32 %v404_v47, %v376_v10  ;;  %v223_v53 = vpop.f32.mrb[7].mxu1 }
  0xe5   :  { %v316_v50 = vadd.f32 %v508_v12, %v295_v41  ;;  %v296_v52 = vmul.f32 %v376_v10, %v191_v48  ;;  %v324_v54 = vadd.f32 %v508_v12, %v303_v45  ;;  %v304_v56 = vmul.f32 %v376_v10, %v223_v53 }
  0xe6   :  { %334 = vst [vmem:[#allocation3 + $0x30] sm:$0xff] %v318_v44  ;;  %v319_v55 = vadd.f32 %v508_v12, %v298_v46  ;;  %342 = vst [vmem:[#allocation3 + $0x70] sm:$0xff] %v326_v49  ;;  %v327_v57 = vadd.f32 %v508_v12, %v306_v51 }
  0xe7   :  { %332 = vst [vmem:[#allocation3 + $0x20] sm:$0xff] %v316_v50  ;;  %v317_v58 = vadd.f32 %v508_v12, %v296_v52  ;;  %340 = vst [vmem:[#allocation3 + $0x60] sm:$0xff] %v324_v54  ;;  %v325_v59 = vadd.f32 %v508_v12, %v304_v56 }
  0xe8   :  { %335 = vst [vmem:[#allocation3 + $0x38] sm:$0xff] %v319_v55  ;;  %343 = vst [vmem:[#allocation3 + $0x78] sm:$0xff] %v327_v57 }
  0xe9   :  { %333 = vst [vmem:[#allocation3 + $0x28] sm:$0xff] %v317_v58  ;;  %341 = vst [vmem:[#allocation3 + $0x68] sm:$0xff] %v325_v59 }
  0xea   :  { %431 = shalt.err (!%p428_p4)
}
  0xeb   :  { %s432_s9 = scalar_lea.hbm %s541_s3, 2048 }
  0xec   :  { %p433_p5 = scmp.ne.s32.totalorder %s541_s3, %s432_s9  ;;  %p436_p6 = scmp.lt.u32.totalorder %s432_s9, %s541_s3 }
  0xee   :  { %p438_p7 = pnand %p436_p6, %p433_p5 }
  0xf0   :  { %441 = shalt.err (!%p438_p7)
}
  0xf1   :  { %s445_s14 = smov 128   ;;  %s446_s15 = smov 8  }
  0xf2   :  { %355 = dma.vmem_to_hbm [thread:$0]  %s350_s2, 2048, %s541_s3, [#allocation4], %s445_s14, %s445_s14, %s446_s15  }
  0xf3   :  { %442 = dma.done.wait [#allocation4], 2048  }
  0xf4   :  { %443 = vsyncadd [#allocation4], 4294965248 }
  0xf5   :  { %359 = vsyncpa [#allocation4], 1 }

</bundles_post_ra>
